<compile_context>
chip_gen: v7x
topology: tpu7x:2x2x1
jax: 0.10.0
libtpu: 0.0.40
codegen_flags: <defaults>
</compile_context>

<pallas_src>
import jax
import jax.numpy as jnp
from jax import lax
from jax.experimental import pallas as pl
from jax.experimental.pallas import tpu as pltpu

_MAX_TILE_LANES = 32768       # ~16 MiB peak VMEM at in=16/hid=32/out=8, f32
_MIN_LANES_PER_CORE = 2048    # only split across TensorCores above this


def _round_up(x, m):
    return -(-x // m) * m


def _tensorcores_per_chip():
    """v7x packs 2 TensorCores per chip; v5e/v6e have 1 (grid = serial loop)."""
    try:
        kind = jax.devices()[0].device_kind.lower()
    except Exception:
        return 1
    return 2 if "v7" in kind else 1


def _softplus(x):
    # Matches torch.nn.Softplus(beta=1, threshold=20): x if x > 20 else
    # log1p(exp(x)). The inf from exp(large) is discarded by the select, so no
    # clamp is needed (one fewer VPU op; exp/log1p ride the EUP slot).
    return jnp.where(x > 20.0, x, jnp.log1p(jnp.exp(x)))


def _make_mlp_kernel(n_layers):
    """Kernel refs = (x, w0, b0, w1, b1, ..., w_{L-1}, b_{L-1}, out).

    x_ref is (tile_b, in_dim); weights are (out, in); biases (out, 1).
    Activations are carried as (features, tile_b): the first layer contracts on
    in_dim via a trans-B dot_general, later layers are plain (out,in)@(in,tile_b).
    Final layer is a plain Linear (no activation).
    """

    def kernel(*refs):
        x_ref = refs[0]
        o_ref = refs[-1]
        params = refs[1:-1]

        x = x_ref[...].astype(jnp.float32)               # (tile_b, in_dim)
        w0 = params[0][...]                               # (h0, in_dim)
        b0 = params[1][...]                               # (h0, 1) lane-broadcast
        # trans-B matmul: contract on in_dim -> lane-dense (h0, tile_b).
        h = lax.dot_general(
            w0, x,
            dimension_numbers=(((1,), (1,)), ((), ())),
            preferred_element_type=jnp.float32,
        ) + b0
        if n_layers > 1:
            h = _softplus(h)

        for li in range(1, n_layers):
            w = params[2 * li][...]                        # (out, in)
            b = params[2 * li + 1][...]                    # (out, 1)
            h = jnp.dot(w, h, preferred_element_type=jnp.float32) + b
            if li < n_layers - 1:                          # final Linear: no act
                h = _softplus(h)

        o_ref[...] = h.astype(o_ref.dtype)                 # (out_dim, tile_b)

    return kernel


def mlp_forward(x, params, *, cond=None, max_tile_lanes=_MAX_TILE_LANES):
    """Run the MLP forward pass with a Pallas kernel.

    x      : (..., in_dim) float32
    params : list of (W, b) with W shape (in, out), b shape (out,)
    cond   : optional (..., C) conditional context, concatenated on last axis
    """
    if cond is not None:                     # skip the pointless zero-width concat
        x = jnp.concatenate([x, cond], axis=-1)

    lead_shape = x.shape[:-1]
    in_dim = x.shape[-1]
    out_dim = params[-1][0].shape[1]

    x2 = x.reshape(-1, in_dim)
    batch = x2.shape[0]

    # One big lane tile: round the batch up to the vreg lane width and clamp to
    # a VMEM-safe maximum (sized against v7x's 64 MiB VMEM / 32 MiB scoped).
    rounded = _round_up(batch, 128)
    tile_b = min(rounded, max(128, (int(max_tile_lanes) // 128) * 128))

    # Only split the grid for multiple TensorCores (v7x) and only when each
    # half still amortizes the per-grid-step overhead.
    if (_tensorcores_per_chip() >= 2
            and tile_b == rounded
            and tile_b >= 2 * _MIN_LANES_PER_CORE):
        tile_b = _round_up(-(-rounded // 2), 128)

    padded_b = _round_up(batch, tile_b)

    if padded_b != batch:
        x2 = jnp.pad(x2, ((0, padded_b - batch), (0, 0)))

    n_layers = len(params)
    kernel = _make_mlp_kernel(n_layers)

    # Weights transposed to (out, in); biases as (out, 1) lane-broadcast columns.
    flat_params = []
    param_specs = []
    for w, b in params:
        wt = jnp.asarray(w).T
        b2 = jnp.asarray(b).reshape(-1, 1)
        flat_params += [wt, b2]
        param_specs += [
            pl.BlockSpec(wt.shape, lambda i: (0, 0)),
            pl.BlockSpec(b2.shape, lambda i: (0, 0)),
        ]

    grid = (padded_b // tile_b,)
    out_t = pl.pallas_call(
        kernel,
        out_shape=jax.ShapeDtypeStruct((out_dim, padded_b), x.dtype),
        grid_spec=pltpu.PrefetchScalarGridSpec(
            num_scalar_prefetch=0,
            grid=grid,
            in_specs=[pl.BlockSpec((tile_b, in_dim), lambda i: (i, 0))]
            + param_specs,
            out_specs=pl.BlockSpec((out_dim, tile_b), lambda i: (0, i)),
        ),
        compiler_params=pltpu.CompilerParams(
            dimension_semantics=("parallel",),
            vmem_limit_bytes=32 * 1024 * 1024,
        ),
    )(x2, *flat_params)

    # Kernel output is kept lane-dense (out_dim, padded_b) — an (N, 8) out_spec
    # would force masked partial stores. The small un-transpose here is the
    # cheaper side of that trade.
    out = out_t[:, :batch].T
    return out.reshape(lead_shape + (out_dim,))


def init_mlp_params(key, input_dim, output_dim, hidden_layer_sizes):
    """Deterministic init matching the PyTorch module:
    kaiming_normal_(weight, mode='fan_out', nonlinearity='relu') -> std = sqrt(2/out)
    bias = 0. Weights returned as (in, out) = W_pytorch.T.
    """
    sizes = [input_dim] + list(hidden_layer_sizes) + [output_dim]
    params = []
    for fan_in, fan_out in zip(sizes[:-1], sizes[1:]):
        key, sub = jax.random.split(key)
        std = (2.0 / fan_out) ** 0.5
        w = std * jax.random.normal(sub, (fan_in, fan_out), dtype=jnp.float32)
        b = jnp.zeros((fan_out,), dtype=jnp.float32)
        params.append((w, b))
    return params


def _ref_forward(x, params, cond=None):
    if cond is not None:
        x = jnp.concatenate([x, cond], axis=-1)
    h = x
    for li, (w, b) in enumerate(params):
        h = h @ w + b
        if li < len(params) - 1:
            h = jnp.where(h > 20.0, h, jnp.log1p(jnp.exp(jnp.minimum(h, 20.0))))
    return h


if __name__ == "__main__":
    key = jax.random.PRNGKey(0)

    input_dim = 16
    output_dim = 8
    hidden_layer_sizes = [32, 32]

    params = init_mlp_params(key, input_dim, output_dim, hidden_layer_sizes)

    # Test 1: cond=None, ragged batch (252 rows -> one 256-lane grid step).
    key, kx = jax.random.split(key)
    x1 = jax.random.normal(kx, (4, 63, input_dim), dtype=jnp.float32)
    out1 = jax.block_until_ready(mlp_forward(x1, params, cond=None))
    ref1 = _ref_forward(x1, params)
    assert out1.shape == (4, 63, output_dim)
    assert jnp.allclose(out1, ref1, atol=1e-5, rtol=1e-5)

    # Test 2: conditional-context path (x 12-d + cond 4-d -> 16-d input).
    key, kx2, kc = jax.random.split(key, 3)
    x2 = jax.random.normal(kx2, (16, 12), dtype=jnp.float32)
    c2 = jax.random.normal(kc, (16, 4), dtype=jnp.float32)
    out2 = jax.block_until_ready(mlp_forward(x2, params, cond=c2))
    ref2 = _ref_forward(x2, params, cond=c2)
    assert out2.shape == (16, output_dim)
    assert jnp.allclose(out2, ref2, atol=1e-5, rtol=1e-5)

    # Test 3: larger batch exercises the multi-step / core-split path.
    key, kx3 = jax.random.split(key)
    x3 = jax.random.normal(kx3, (5000, input_dim), dtype=jnp.float32)
    out3 = jax.block_until_ready(mlp_forward(x3, params))
    ref3 = _ref_forward(x3, params)
    assert out3.shape == (5000, output_dim)
    assert jnp.allclose(out3, ref3, atol=1e-5, rtol=1e-5)

    print("KERNEL_OK")
</pallas_src>

<mosaic_0001>
module attributes {stable_mosaic.version = 11 : i64} {
  func.func @kernel(%arg0: i32, %arg1: memref<256x16xf32, #tpu.memory_space<vmem>>, %arg2: memref<32x16xf32, #tpu.memory_space<vmem>>, %arg3: memref<32x1xf32, #tpu.memory_space<vmem>>, %arg4: memref<32x32xf32, #tpu.memory_space<vmem>>, %arg5: memref<32x1xf32, #tpu.memory_space<vmem>>, %arg6: memref<8x32xf32, #tpu.memory_space<vmem>>, %arg7: memref<8x1xf32, #tpu.memory_space<vmem>>, %arg8: memref<8x256xf32, #tpu.memory_space<vmem>>) attributes {dimension_semantics = [#tpu.dimension_semantics<parallel>], iteration_bounds = array<i64: 1>, scalar_prefetch = 0 : i64, scratch_operands = 0 : i64, tpu.core_type = #tpu.core_type<tc>, window_params = [{transform_indices = @transform_0, window_bounds = array<i64: 256, 16>}, {pipeline_mode = #tpu.pipeline_mode<synchronous>, transform_indices = @transform_1, window_bounds = array<i64: 32, 16>}, {pipeline_mode = #tpu.pipeline_mode<synchronous>, transform_indices = @transform_2, window_bounds = array<i64: 32, 1>}, {pipeline_mode = #tpu.pipeline_mode<synchronous>, transform_indices = @transform_3, window_bounds = array<i64: 32, 32>}, {pipeline_mode = #tpu.pipeline_mode<synchronous>, transform_indices = @transform_4, window_bounds = array<i64: 32, 1>}, {pipeline_mode = #tpu.pipeline_mode<synchronous>, transform_indices = @transform_5, window_bounds = array<i64: 8, 32>}, {pipeline_mode = #tpu.pipeline_mode<synchronous>, transform_indices = @transform_6, window_bounds = array<i64: 8, 1>}, {transform_indices = @transform_7, window_bounds = array<i64: 8, 256>}]} {
    %c0 = arith.constant 0 : index
    %c0_0 = arith.constant 0 : index
    %0 = vector.load %arg1[%c0, %c0_0] : memref<256x16xf32, #tpu.memory_space<vmem>>, vector<256x16xf32>
    %c0_1 = arith.constant 0 : index
    %c0_2 = arith.constant 0 : index
    %1 = vector.load %arg2[%c0_1, %c0_2] : memref<32x16xf32, #tpu.memory_space<vmem>>, vector<32x16xf32>
    %c0_3 = arith.constant 0 : index
    %c0_4 = arith.constant 0 : index
    %2 = vector.load %arg3[%c0_3, %c0_4] : memref<32x1xf32, #tpu.memory_space<vmem>>, vector<32x1xf32>
    %cst = arith.constant dense<0.000000e+00> : vector<32x256xf32>
    %3 = tpu.matmul %1, %0, %cst {dimension_numbers = #tpu.dot_dimension_numbers<[1], [1], [0], [0], [0, 0, 1, 0], [], []>} : vector<32x16xf32>, vector<256x16xf32>, vector<32x256xf32> -> vector<32x256xf32>
    %4 = vector.broadcast %2 : vector<32x1xf32> to vector<32x256xf32>
    %5 = arith.addf %3, %4 : vector<32x256xf32>
    %cst_5 = arith.constant 2.000000e+01 : f32
    %6 = vector.broadcast %cst_5 : f32 to vector<32x256xf32>
    %7 = arith.cmpf ogt, %5, %6 : vector<32x256xf32>
    %8 = math.exp %5 : vector<32x256xf32>
    %9 = math.log1p %8 : vector<32x256xf32>
    %10 = arith.select %7, %5, %9 : vector<32x256xi1>, vector<32x256xf32>
    %c0_6 = arith.constant 0 : index
    %c0_7 = arith.constant 0 : index
    %11 = vector.load %arg4[%c0_6, %c0_7] : memref<32x32xf32, #tpu.memory_space<vmem>>, vector<32x32xf32>
    %c0_8 = arith.constant 0 : index
    %c0_9 = arith.constant 0 : index
    %12 = vector.load %arg5[%c0_8, %c0_9] : memref<32x1xf32, #tpu.memory_space<vmem>>, vector<32x1xf32>
    %cst_10 = arith.constant dense<0.000000e+00> : vector<32x256xf32>
    %13 = tpu.matmul %11, %10, %cst_10 {dimension_numbers = #tpu.dot_dimension_numbers<[1], [0], [0], [1], [0, 0, 1, 1], [], []>} : vector<32x32xf32>, vector<32x256xf32>, vector<32x256xf32> -> vector<32x256xf32>
    %14 = vector.broadcast %12 : vector<32x1xf32> to vector<32x256xf32>
    %15 = arith.addf %13, %14 : vector<32x256xf32>
    %cst_11 = arith.constant 2.000000e+01 : f32
    %16 = vector.broadcast %cst_11 : f32 to vector<32x256xf32>
    %17 = arith.cmpf ogt, %15, %16 : vector<32x256xf32>
    %18 = math.exp %15 : vector<32x256xf32>
    %19 = math.log1p %18 : vector<32x256xf32>
    %20 = arith.select %17, %15, %19 : vector<32x256xi1>, vector<32x256xf32>
    %c0_12 = arith.constant 0 : index
    %c0_13 = arith.constant 0 : index
    %21 = vector.load %arg6[%c0_12, %c0_13] : memref<8x32xf32, #tpu.memory_space<vmem>>, vector<8x32xf32>
    %c0_14 = arith.constant 0 : index
    %c0_15 = arith.constant 0 : index
    %22 = vector.load %arg7[%c0_14, %c0_15] : memref<8x1xf32, #tpu.memory_space<vmem>>, vector<8x1xf32>
    %cst_16 = arith.constant dense<0.000000e+00> : vector<8x256xf32>
    %23 = tpu.matmul %21, %20, %cst_16 {dimension_numbers = #tpu.dot_dimension_numbers<[1], [0], [0], [1], [0, 0, 1, 1], [], []>} : vector<8x32xf32>, vector<32x256xf32>, vector<8x256xf32> -> vector<8x256xf32>
    %24 = vector.broadcast %22 : vector<8x1xf32> to vector<8x256xf32>
    %25 = arith.addf %23, %24 : vector<8x256xf32>
    %c0_17 = arith.constant 0 : index
    %c0_18 = arith.constant 0 : index
    %26 = vector.load %arg8[%c0_17, %c0_18] : memref<8x256xf32, #tpu.memory_space<vmem>>, vector<8x256xf32>
    tpu.vector_store %arg8[%c0_17, %c0_18], %25 {strides = array<i32>} : memref<8x256xf32, #tpu.memory_space<vmem>>, vector<8x256xf32>,
    return
  }
  func.func @transform_0(%arg0: i32) -> (i32, i32) {
    %c0_i32 = arith.constant 0 : i32
    %c0_i32_0 = arith.constant 0 : i32
    return %arg0, %c0_i32 : i32, i32
  }
  func.func @transform_1(%arg0: i32) -> (i32, i32) {
    %c0_i32 = arith.constant 0 : i32
    %c0_i32_0 = arith.constant 0 : i32
    %c0_i32_1 = arith.constant 0 : i32
    return %c0_i32, %c0_i32_0 : i32, i32
  }
  func.func @transform_2(%arg0: i32) -> (i32, i32) {
    %c0_i32 = arith.constant 0 : i32
    %c0_i32_0 = arith.constant 0 : i32
    %c0_i32_1 = arith.constant 0 : i32
    return %c0_i32, %c0_i32_0 : i32, i32
  }
  func.func @transform_3(%arg0: i32) -> (i32, i32) {
    %c0_i32 = arith.constant 0 : i32
    %c0_i32_0 = arith.constant 0 : i32
    %c0_i32_1 = arith.constant 0 : i32
    return %c0_i32, %c0_i32_0 : i32, i32
  }
  func.func @transform_4(%arg0: i32) -> (i32, i32) {
    %c0_i32 = arith.constant 0 : i32
    %c0_i32_0 = arith.constant 0 : i32
    %c0_i32_1 = arith.constant 0 : i32
    return %c0_i32, %c0_i32_0 : i32, i32
  }
  func.func @transform_5(%arg0: i32) -> (i32, i32) {
    %c0_i32 = arith.constant 0 : i32
    %c0_i32_0 = arith.constant 0 : i32
    %c0_i32_1 = arith.constant 0 : i32
    return %c0_i32, %c0_i32_0 : i32, i32
  }
  func.func @transform_6(%arg0: i32) -> (i32, i32) {
    %c0_i32 = arith.constant 0 : i32
    %c0_i32_0 = arith.constant 0 : i32
    %c0_i32_1 = arith.constant 0 : i32
    return %c0_i32, %c0_i32_0 : i32, i32
  }
  func.func @transform_7(%arg0: i32) -> (i32, i32) {
    %c0_i32 = arith.constant 0 : i32
    %c0_i32_0 = arith.constant 0 : i32
    return %c0_i32, %arg0 : i32, i32
  }
}

</mosaic_0001>

<bundles_post_ra>
// kernel: tpu_custom_call.1
= control target key start
LH: loop header
LB: loop body
LE: loop exit
PB: predicated region body
PF: predicated region fallthrough
CT: control target
= control target key end

     0   :  { %vm87_vm0 = vcmask 130048   ;;  %v958_v7 = vmov 0   ;;  %s1429_s0 = inlined_call_operand.vmem [shape: f32[256,16], index: 0, kind: input, shape index: {}]   ;;  %s1430_s1 = inlined_call_operand.vmem [shape: f32[32,16], index: 1, kind: input, shape index: {}]   ;;  %s1431_s2 = inlined_call_operand.vmem [shape: f32[32,1], index: 2, kind: input, shape index: {}]   ;;  %s1432_s3 = inlined_call_operand.vmem [shape: f32[32,32], index: 3, kind: input, shape index: {}]   ;;  %s1433_s4 = inlined_call_operand.vmem [shape: f32[32,1], index: 4, kind: input, shape index: {}]   ;;  %s1434_s5 = inlined_call_operand.vmem [shape: f32[8,32], index: 5, kind: input, shape index: {}]   ;;  %s1435_s6 = inlined_call_operand.vmem [shape: f32[8,1], index: 6, kind: input, shape index: {}]   ;;  %s1436_s7 = inlined_call_operand.hbm [shape: f32[8,256], index: 7, kind: output, shape index: {}]  }
   0x1   :  { %v43_v0 = vld [vmem:[%s1429_s0 + $0x80] sm:$0xff]  ;;  %v44_v1 = vld [vmem:[%s1429_s0 + $0x88] sm:$0xff]  ;;  %vm1012_vm1 = vmpackc.low %vm87_vm0, %vm87_vm0  ;;  %868 = vset.pattern.permute.xlu0 %v958_v7  ;;  %869 = vset.pattern.permute.xlu1 %v958_v7 }
   0x2   :  { %v27_v2 = vld [vmem:[%s1429_s0] sm:$0xff]  ;;  %v801_v3 = vpack.c.bf16 %v44_v1, %v43_v0  ;;  %v28_v5 = vld [vmem:[%s1429_s0 + $0x8] sm:$0xff]  ;;  %v45_v6 = vld [vmem:[%s1429_s0 + $0x90] sm:$0xff] }
   0x3   :  { %v804_v8 = vpack.c.bf16 %v28_v5, %v27_v2  ;;  %v46_v9 = vld [vmem:[%s1429_s0 + $0x98] sm:$0xff]  ;;  %v29_v11 = vld [vmem:[%s1429_s0 + $0x10] sm:$0xff]  ;;  %v47_v13 = vld [vmem:[%s1429_s0 + $0xa0] sm:$0xff] }
   0x4   :  { %803 = vmatprep.subr.msk.bf16.mxu0 %vm1012_vm1, %v801_v3  ;;  %v807_v10 = vpack.c.bf16 %v46_v9, %v45_v6  ;;  %v30_v12 = vld [vmem:[%s1429_s0 + $0x18] sm:$0xff]  ;;  %v48_v14 = vld [vmem:[%s1429_s0 + $0xa8] sm:$0xff]  ;;  %v1046_v17 = vld [vmem:[%s1430_s1] sm:$0xff] }
   0x5   :  { %806 = vmatpush3.bf16.xpose.msk.msra.mxu0 %vm1012_vm1, %v804_v8  ;;  %v810_v15 = vpack.c.bf16 %v30_v12, %v29_v11  ;;  %v813_v16 = vpack.c.bf16 %v48_v14, %v47_v13  ;;  %793 = vmatprep.mubr.msk.f32.mxu0 %vm87_vm0, %v1046_v17  ;;  %v63_v18 = vld [vmem:[%s1431_s2] sm:$0xff]  ;;  %v32_v20 = vld [vmem:[%s1429_s0 + $0x28] sm:$0xff]  ;;  %v65_v21 = vld [vmem:[%s1431_s2 + $0x10] sm:$0xff] }
   0x6   :  { %809 = vmatprep.subr.msk.bf16.mxu0 %vm1012_vm1, %v807_v10  ;;  %v31_v19 = vld [vmem:[%s1429_s0 + $0x20] sm:$0xff]  ;;  %69 = vperm.xlu0 %868, %v63_v18   ;;  %v49_v22 = vld [vmem:[%s1429_s0 + $0xb0] sm:$0xff]  ;;  %v50_v23 = vld [vmem:[%s1429_s0 + $0xb8] sm:$0xff] }
   0x7   :  { %v64_v24 = vld [vmem:[%s1431_s2 + $0x8] sm:$0xff]  ;;  %79 = vperm.xlu1 %869, %v65_v21   ;;  %v66_v25 = vld [vmem:[%s1431_s2 + $0x18] sm:$0xff] }
   0xd   :  { %812 = vmatpush3.bf16.xpose.msk.msra.mxu0 %vm1012_vm1, %v810_v15 }
   0xe   :  { %815 = vmatprep.subr.msk.bf16.mxu0 %vm1012_vm1, %v813_v16 }
   0xf   :  { %12 = vsyncpa [#allocation3], 0  ;;  %v816_v26 = vpack.c.bf16 %v32_v20, %v31_v19  ;;  %v819_v27 = vpack.c.bf16 %v50_v23, %v49_v22  ;;  %74 = vperm.xlu0 %868, %v64_v24   ;;  %v393_v28 = vld [vmem:[%s1433_s4] sm:$0xff]  ;;  %84 = vperm.xlu1 %869, %v66_v25   ;;  %v394_v29 = vld [vmem:[%s1433_s4 + $0x8] sm:$0xff]  ;;  %v959_v63 = vmov 0.0   ;;  %s960_s22 = smov [#allocation2]  }
  0x10   :  { %v33_v30 = vld [vmem:[%s1429_s0 + $0x30] sm:$0xff]  ;;  %v34_v31 = vld [vmem:[%s1429_s0 + $0x38] sm:$0xff]  ;;  %v51_v32 = vld [vmem:[%s1429_s0 + $0xc0] sm:$0xff]  ;;  %494 = vmatprep.mubr.f32.mxu1 %v959_v63  ;;  %s712_s23 = sshll.u32 %s960_s22, 4  ;;  %s713_s23 = int_to_ptr.vmem [resolvable:$true] %s712_s23 }
  0x11   :  { %v52_v33 = vld [vmem:[%s1429_s0 + $0xc8] sm:$0xff]  ;;  %v395_v34 = vld [vmem:[%s1433_s4 + $0x10] sm:$0xff]  ;;  %v396_v35 = vld [vmem:[%s1433_s4 + $0x18] sm:$0xff]  ;;  %v822_v36 = vpack.c.bf16 %v34_v31, %v33_v30  ;;  %s934_s24 = scalar_lea.vmem %s713_s23, 256  ;;  %p939_p1 = scmp.lt.s32.totalorder %s713_s23, %s713_s23 }
  0x12   :  { %v825_v37 = vpack.c.bf16 %v52_v33, %v51_v32  ;;  %v624_v38 = vld [vmem:[%s1435_s6] sm:$0xff]  ;;  %v36_v40 = vld [vmem:[%s1429_s0 + $0x48] sm:$0xff]  ;;  %v53_v41 = vld [vmem:[%s1429_s0 + $0xd0] sm:$0xff]  ;;  %p935_p0 = scmp.ne.s32.totalorder %s713_s23, %s934_s24  ;;  %p940_p2 = scmp.lt.s32.totalorder %s934_s24, %s934_s24 }
  0x13   :  { %399 = vperm.xlu0 %868, %v393_v28   ;;  %404 = vperm.xlu1 %869, %v394_v29   ;;  %v35_v39 = vld [vmem:[%s1429_s0 + $0x40] sm:$0xff]  ;;  %v54_v42 = vld [vmem:[%s1429_s0 + $0xd8] sm:$0xff]  ;;  %v37_v45 = vld [vmem:[%s1429_s0 + $0x50] sm:$0xff] }
  0x14   :  { %v828_v43 = vpack.c.bf16 %v36_v40, %v35_v39  ;;  %v831_v44 = vpack.c.bf16 %v54_v42, %v53_v41  ;;  %v38_v46 = vld [vmem:[%s1429_s0 + $0x58] sm:$0xff]  ;;  %v55_v47 = vld [vmem:[%s1429_s0 + $0xe0] sm:$0xff]  ;;  %v56_v48 = vld [vmem:[%s1429_s0 + $0xe8] sm:$0xff]  ;;  %p941_p3 = por %p940_p2, %p939_p1 }
  0x15   :  { %818 = vmatpush3.bf16.xpose.msk.msra.mxu0 %vm1012_vm1, %v816_v26  ;;  %v834_v49 = vpack.c.bf16 %v38_v46, %v37_v45  ;;  %v837_v50 = vpack.c.bf16 %v56_v48, %v55_v47  ;;  %v39_v51 = vld [vmem:[%s1429_s0 + $0x60] sm:$0xff]  ;;  %v40_v52 = vld [vmem:[%s1429_s0 + $0x68] sm:$0xff]  ;;  %v57_v53 = vld [vmem:[%s1429_s0 + $0xf0] sm:$0xff] }
  0x16   :  { %821 = vmatprep.subr.msk.bf16.mxu0 %vm1012_vm1, %v819_v27  ;;  %v58_v54 = vld [vmem:[%s1429_s0 + $0xf8] sm:$0xff]  ;;  %v840_v55 = vpack.c.bf16 %v40_v52, %v39_v51  ;;  %v41_v57 = vld [vmem:[%s1429_s0 + $0x70] sm:$0xff]  ;;  %v60_v60 = vld [vmem:[%s1430_s1 + $0x8] sm:$0xff]  ;;  %p942_p4 = pnand %p941_p3, %p935_p0 }
  0x17   :  { %409 = vperm.xlu0 %868, %v395_v34   ;;  %414 = vperm.xlu1 %869, %v396_v35   ;;  %v843_v56 = vpack.c.bf16 %v58_v54, %v57_v53  ;;  %v42_v58 = vld [vmem:[%s1429_s0 + $0x78] sm:$0xff]  ;;  %v61_v61 = vld [vmem:[%s1430_s1 + $0x10] sm:$0xff] }
  0x18   :  { %v846_v59 = vpack.c.bf16 %v42_v58, %v41_v57  ;;  %v62_v62 = vld [vmem:[%s1430_s1 + $0x18] sm:$0xff] }
  0x1b   :  { %627 = vperm.xlu0 %868, %v624_v38  }
  0x1d   :  { %824 = vmatpush3.bf16.xpose.msk.msra.mxu0 %vm1012_vm1, %v822_v36 }
  0x1e   :  { %827 = vmatprep.subr.msk.bf16.mxu0 %vm1012_vm1, %v825_v37 }
  0x25   :  { %830 = vmatpush3.bf16.xpose.msk.msra.mxu0 %vm1012_vm1, %v828_v43 }
  0x26   :  { %833 = vmatprep.subr.msk.bf16.mxu0 %vm1012_vm1, %v831_v44 }
  0x2d   :  { %836 = vmatpush3.bf16.xpose.msk.msra.mxu0 %vm1012_vm1, %v834_v49 }
  0x2e   :  { %839 = vmatprep.subr.msk.bf16.mxu0 %vm1012_vm1, %v837_v50 }
  0x35   :  { %842 = vmatpush3.bf16.xpose.msk.msra.mxu0 %vm1012_vm1, %v840_v55 }
  0x36   :  { %845 = vmatprep.subr.msk.bf16.mxu0 %vm1012_vm1, %v843_v56 }
  0x3d   :  { %848 = vmatpush3.bf16.xpose.msk.msra.mxu0 %vm1012_vm1, %v846_v59 }
  0x44   :  { %794 = vmatmul.mubr.msk.f32.vlgmr.msra.gmra.mrb[0].mxu0 %vm87_vm0, %v1046_v17 }
  0x45   :  { %795 = vmatprep.mubr.msk.f32.mxu0 %vm87_vm0, %v60_v60 }
  0x48   :  { %796 = vmatmul.mubr.msk.f32.gmra.mrb[2].mxu0 %vm87_vm0, %v60_v60 }
  0x49   :  { %797 = vmatprep.mubr.msk.f32.mxu0 %vm87_vm0, %v61_v61 }
  0x4c   :  { %798 = vmatmul.mubr.msk.f32.gmra.mrb[4].mxu0 %vm87_vm0, %v61_v61 }
  0x4d   :  { %799 = vmatprep.mubr.msk.f32.mxu0 %vm87_vm0, %v62_v62 }
  0x50   :  { %800 = vmatmul.mubr.msk.f32.gmra.mrb[6].mxu0 %vm87_vm0, %v62_v62 }
  0x85   :  { %v70_v0 = vpop.permute.xlu0 %69 }
  0x86   :  { %v80_v11 = vpop.permute.xlu1 %79 }
  0x8e   :  { %v75_v6 = vpop.permute.xlu0 %74  ;;  %v85_v20 = vpop.permute.xlu1 %84 }
 0x117   :  { %v262_v1 = vpop.f32.mrb[0].mxu0 }
 0x118   :  { %v1187_v2 = vadd.f32 %v262_v1, %v70_v0  ;;  %v264_v3 = vpop.f32.mrb[1].mxu0 }
 0x119   :  { %v1189_v4 = vadd.f32 %v264_v3, %v70_v0 }
 0x11a   :  { %v293_v5 = vmul.f32 1.442695, %v1187_v2  ;;  %vm285_vm2 = vcmp.gt.f32.partialorder %v1187_v2, 20.0 }
 0x11b   :  { %v295_v7 = vmul.f32 1.442695, %v1189_v4  ;;  %v268_v8 = vpop.f32.mrb[2].mxu0  ;;  %vm286_vm4 = vcmp.gt.f32.partialorder %v1189_v4, 20.0 }
 0x11c   :  { %870 = vpow2.f32 %v293_v5  ;;  %v1193_v9 = vadd.f32 %v268_v8, %v75_v6  ;;  %v270_v10 = vpop.f32.mrb[3].mxu0 }
 0x11d   :  { %872 = vpow2.f32 %v295_v7  ;;  %v1195_v12 = vadd.f32 %v270_v10, %v75_v6 }
 0x11e   :  { %v297_v13 = vmul.f32 1.442695, %v1193_v9  ;;  %vm287_vm3 = vcmp.gt.f32.partialorder %v1193_v9, 20.0 }
 0x11f   :  { %v299_v14 = vmul.f32 1.442695, %v1195_v12  ;;  %v274_v15 = vpop.f32.mrb[4].mxu0  ;;  %vm288_vm5 = vcmp.gt.f32.partialorder %v1195_v12, 20.0 }
 0x120   :  { %874 = vpow2.f32 %v297_v13  ;;  %v1199_v16 = vadd.f32 %v274_v15, %v80_v11  ;;  %v276_v17 = vpop.f32.mrb[5].mxu0 }
 0x121   :  { %876 = vpow2.f32 %v299_v14  ;;  %v1201_v18 = vadd.f32 %v276_v17, %v80_v11 }
 0x122   :  { %v301_v19 = vmul.f32 1.442695, %v1199_v16  ;;  %vm289_vm10 = vcmp.gt.f32.partialorder %v1199_v16, 20.0 }
 0x123   :  { %v303_v21 = vmul.f32 1.442695, %v1201_v18  ;;  %v280_v22 = vpop.f32.mrb[6].mxu0  ;;  %vm290_vm14 = vcmp.gt.f32.partialorder %v1201_v18, 20.0 }
 0x124   :  { %878 = vpow2.f32 %v301_v19  ;;  %v1205_v23 = vadd.f32 %v280_v22, %v85_v20  ;;  %v282_v24 = vpop.f32.mrb[7].mxu0 }
 0x125   :  { %880 = vpow2.f32 %v303_v21  ;;  %v1207_v25 = vadd.f32 %v282_v24, %v85_v20 }
 0x126   :  { %v871_v26 = vpop.eup %870  ;;  %v305_v27 = vmul.f32 1.442695, %v1205_v23  ;;  %vm291_vm15 = vcmp.gt.f32.partialorder %v1205_v23, 20.0 }
 0x127   :  { %v873_v28 = vpop.eup %872  ;;  %v307_v29 = vmul.f32 1.442695, %v1207_v25  ;;  %v309_v30 = vadd.f32 1.0, %v871_v26  ;;  %v312_v36 = vmul.f32 -0.5, %v871_v26  ;;  %v315_v46 = vand.u32 2147483647, %v871_v26 }
 0x128   :  { %882 = vpow2.f32 %v305_v27  ;;  %v318_v31 = vadd.f32 1.0, %v873_v28  ;;  %v321_v39 = vmul.f32 -0.5, %v873_v28  ;;  %v324_v41 = vand.u32 2147483647, %v873_v28 }
 0x129   :  { %884 = vpow2.f32 %v307_v29  ;;  %v313_v45 = vadd.f32 1.0, %v312_v36  ;;  %vm1231_vm7 = vcmp.lt.f32.partialorder %v315_v46, 0.0004427343  ;;  %vm292_vm1 = vcmp.gt.f32.partialorder %v1207_v25, 20.0 }
 0x12a   :  { %v875_v32 = vpop.eup %874  ;;  %886 = vlog2.f32 %v318_v31  ;;  %v322_v49 = vadd.f32 1.0, %v321_v39  ;;  %vm1226_vm6 = vcmp.lt.f32.partialorder %v324_v41, 0.0004427343 }
 0x12b   :  { %v877_v33 = vpop.eup %876  ;;  %888 = vlog2.f32 %v309_v30  ;;  %v327_v34 = vadd.f32 1.0, %v875_v32  ;;  %v330_v43 = vmul.f32 -0.5, %v875_v32  ;;  %v333_v51 = vand.u32 2147483647, %v875_v32 }
 0x12c   :  { %v336_v35 = vadd.f32 1.0, %v877_v33  ;;  %v339_v42 = vmul.f32 -0.5, %v877_v33  ;;  %v342_v50 = vand.u32 2147483647, %v877_v33  ;;  %v314_v60 = vmul.f32 %v871_v26, %v313_v45 }
 0x12d   :  { %890 = vlog2.f32 %v327_v34  ;;  %v331_v56 = vadd.f32 1.0, %v330_v43  ;;  %v323_v5 = vmul.f32 %v873_v28, %v322_v49  ;;  %vm1241_vm9 = vcmp.lt.f32.partialorder %v333_v51, 0.0004427343 }
 0x12e   :  { %v1211_v37 = vpop.eup %878  ;;  %892 = vlog2.f32 %v336_v35  ;;  %v340_v55 = vadd.f32 1.0, %v339_v42  ;;  %vm1237_vm8 = vcmp.lt.f32.partialorder %v342_v50, 0.0004427343 }
 0x12f   :  { %v1213_v38 = vpop.eup %880  ;;  %v345_v40 = vadd.f32 1.0, %v1211_v37  ;;  %v348_v1 = vmul.f32 -0.5, %v1211_v37  ;;  %v332_v15 = vmul.f32 %v875_v32, %v331_v56  ;;  %v351_v27 = vand.u32 2147483647, %v1211_v37 }
 0x130   :  { %v354_v44 = vadd.f32 1.0, %v1213_v38  ;;  %v357_v0 = vmul.f32 -0.5, %v1213_v38  ;;  %v341_v11 = vmul.f32 %v877_v33, %v340_v55  ;;  %v360_v20 = vand.u32 2147483647, %v1213_v38 }
 0x131   :  { %894 = vlog2.f32 %v345_v40  ;;  %v349_v26 = vadd.f32 1.0, %v348_v1  ;;  %vm1274_vm11 = vcmp.lt.f32.partialorder %v351_v27, 0.0004427343 }
 0x132   :  { %v1217_v47 = vpop.eup %882  ;;  %896 = vlog2.f32 %v354_v44  ;;  %v358_v24 = vadd.f32 1.0, %v357_v0  ;;  %vm1278_vm12 = vcmp.lt.f32.partialorder %v360_v20, 0.0004427343 }
 0x133   :  { %v1221_v48 = vpop.eup %884  ;;  %v363_v52 = vadd.f32 1.0, %v1217_v47  ;;  %v366_v8 = vmul.f32 -0.5, %v1217_v47 }
 0x134   :  { %v887_v53 = vpop.eup %886  ;;  %v372_v57 = vadd.f32 1.0, %v1221_v48  ;;  %v375_v21 = vmul.f32 -0.5, %v1221_v48  ;;  %v378_v43 = vand.u32 2147483647, %v1221_v48 }
 0x135   :  { %v889_v58 = vpop.eup %888  ;;  %v320_v59 = vmul.f32 0.6931472, %v887_v53  ;;  %898 = vlog2.f32 %v363_v52  ;;  %v367_v32 = vadd.f32 1.0, %v366_v8 }
 0x136   :  { %v311_v62 = vmul.f32 0.6931472, %v889_v58  ;;  %900 = vlog2.f32 %v372_v57  ;;  %v376_v42 = vadd.f32 1.0, %v375_v21  ;;  %vm379_vm0 = vcmp.lt.f32.partialorder %v378_v43, 0.0004427343 }
 0x137   :  { %v891_v3 = vpop.eup %890  ;;  %v326_v17 = vsel %vm1226_vm6, %v323_v5, %v320_v59  ;;  %v368_v50 = vmul.f32 %v1217_v47, %v367_v32  ;;  %v389_v59 = vld [vmem:[%s1432_s3] sm:$0xff] }
 0x138   :  { %v893_v10 = vpop.eup %892  ;;  %v317_v13 = vsel %vm1231_vm7, %v314_v60, %v311_v62  ;;  %v329_v14 = vmul.f32 0.6931472, %v891_v3  ;;  %v382_v34 = vsel %vm286_vm4, %v1189_v4, %v326_v17  ;;  %v359_v4 = vmul.f32 %v1213_v38, %v358_v24  ;;  %v405_v3 = vpop.permute.xlu1 %404 }
 0x139   :  { %v338_v19 = vmul.f32 0.6931472, %v893_v10  ;;  %v381_v30 = vsel %vm285_vm2, %v1187_v2, %v317_v13  ;;  %v369_v2 = vand.u32 2147483647, %v1217_v47  ;;  %v377_v52 = vmul.f32 %v1221_v48, %v376_v42 }
 0x13a   :  { %v335_v22 = vsel %vm1241_vm9, %v332_v15, %v329_v14  ;;  %vm417_vm2 = vcmask 261120  }
 0x13b   :  { %v895_v28 = vpop.eup %894  ;;  %v344_v29 = vsel %vm1237_vm8, %v341_v11, %v338_v19  ;;  %v383_v31 = vsel %vm287_vm3, %v1193_v9, %v335_v22  ;;  %v350_v9 = vmul.f32 %v1211_v37, %v349_v26  ;;  %vm370_vm13 = vcmp.lt.f32.partialorder %v369_v2, 0.0004427343 }
 0x13c   :  { %v897_v33 = vpop.eup %896  ;;  %v384_v35 = vsel %vm288_vm5, %v1195_v12, %v344_v29  ;;  %v851_v36 = vpack.c.bf16 %v383_v31, %v381_v30  ;;  %v347_v39 = vmul.f32 0.6931472, %v895_v28  ;;  %v415_v21 = vpop.permute.xlu1 %414 }
 0x13d   :  { %v849_v40 = vpack.c.bf16 %v384_v35, %v382_v34  ;;  %v356_v41 = vmul.f32 0.6931472, %v897_v33 }
 0x13e   :  { %v353_v49 = vsel %vm1274_vm11, %v350_v9, %v347_v39 }
 0x13f   :  { %v899_v44 = vpop.eup %898  ;;  %850 = vmatprep.subr.bf16.mxu1 %v849_v40  ;;  %v362_v51 = vsel %vm1278_vm12, %v359_v4, %v356_v41  ;;  %v385_v47 = vsel %vm289_vm10, %v1199_v16, %v353_v49  ;;  %v390_v16 = vld [vmem:[%s1432_s3 + $0x8] sm:$0xff] }
 0x140   :  { %v901_v12 = vpop.eup %900  ;;  %852 = vmatpush1.bf16.msra.mxu1 %v851_v36  ;;  %v365_v37 = vmul.f32 0.6931472, %v899_v44  ;;  %v386_v56 = vsel %vm290_vm14, %v1201_v18, %v362_v51  ;;  %v391_v18 = vld [vmem:[%s1432_s3 + $0x10] sm:$0xff] }
 0x141   :  { %v374_v38 = vmul.f32 0.6931472, %v901_v12 }
 0x142   :  { %v371_v53 = vsel %vm370_vm13, %v368_v50, %v365_v37 }
 0x143   :  { %v380_v54 = vsel %vm379_vm0, %v377_v52, %v374_v38  ;;  %v387_v55 = vsel %vm291_vm15, %v1205_v23, %v371_v53  ;;  %v392_v23 = vld [vmem:[%s1432_s3 + $0x18] sm:$0xff] }
 0x144   :  { %v388_v48 = vsel %vm292_vm1, %v1207_v25, %v380_v54  ;;  %v855_v57 = vpack.c.bf16 %v387_v55, %v385_v47  ;;  %v400_v25 = vpop.permute.xlu0 %399 }
 0x145   :  { %v853_v58 = vpack.c.bf16 %v388_v48, %v386_v56 }
 0x147   :  { %854 = vmatprep.subr.bf16.mxu1 %v853_v58 }
 0x148   :  { %856 = vmatpush1.bf16.msra.mxu1 %v855_v57  ;;  %v410_v11 = vpop.permute.xlu0 %409 }
 0x14b   :  { %756 = vmatmul.mubr.msk.f32.vlgmr.msra.gmra.mrb[0].mxu1 %vm417_vm2, %v389_v59 }
 0x14c   :  { %500 = vmatprep.mubr.f32.mxu1 %v959_v63 }
 0x14f   :  { %757 = vmatmul.mubr.msk.f32.gmra.mrb[2].mxu1 %vm417_vm2, %v390_v16 }
 0x150   :  { %506 = vmatprep.mubr.f32.mxu1 %v959_v63 }
 0x153   :  { %758 = vmatmul.mubr.msk.f32.gmra.mrb[4].mxu1 %vm417_vm2, %v391_v18 }
 0x154   :  { %512 = vmatprep.mubr.f32.mxu1 %v959_v63 }
 0x157   :  { %759 = vmatmul.mubr.msk.f32.gmra.mrb[6].mxu1 %vm417_vm2, %v392_v23 }
 0x158   :  { %697 = vmatprep.mubr.f32.mxu1 %v959_v63 }
 0x21e   :  { %v496_v60 = vpop.f32.mrb[0].mxu1 }
 0x21f   :  { %v1317_v61 = vadd.f32 %v496_v60, %v400_v25  ;;  %v498_v62 = vpop.f32.mrb[1].mxu1 }
 0x220   :  { %v1319_v0 = vadd.f32 %v498_v62, %v400_v25 }
 0x221   :  { %v527_v1 = vmul.f32 1.442695, %v1317_v61  ;;  %vm519_vm3 = vcmp.gt.f32.partialorder %v1317_v61, 20.0 }
 0x222   :  { %v529_v5 = vmul.f32 1.442695, %v1319_v0  ;;  %v502_v6 = vpop.f32.mrb[2].mxu1  ;;  %vm520_vm4 = vcmp.gt.f32.partialorder %v1319_v0, 20.0 }
 0x223   :  { %902 = vpow2.f32 %v527_v1  ;;  %v1323_v7 = vadd.f32 %v502_v6, %v405_v3  ;;  %v504_v8 = vpop.f32.mrb[3].mxu1 }
 0x224   :  { %904 = vpow2.f32 %v529_v5  ;;  %v1325_v10 = vadd.f32 %v504_v8, %v405_v3 }
 0x225   :  { %v531_v63 = vmul.f32 1.442695, %v1323_v7  ;;  %vm521_vm5 = vcmp.gt.f32.partialorder %v1323_v7, 20.0 }
 0x226   :  { %v533_v13 = vmul.f32 1.442695, %v1325_v10  ;;  %v508_v14 = vpop.f32.mrb[4].mxu1  ;;  %vm522_vm6 = vcmp.gt.f32.partialorder %v1325_v10, 20.0 }
 0x227   :  { %906 = vpow2.f32 %v531_v63  ;;  %v1329_v15 = vadd.f32 %v508_v14, %v410_v11  ;;  %v510_v17 = vpop.f32.mrb[5].mxu1 }
 0x228   :  { %908 = vpow2.f32 %v533_v13  ;;  %v1331_v19 = vadd.f32 %v510_v17, %v410_v11 }
 0x229   :  { %v535_v20 = vmul.f32 1.442695, %v1329_v15  ;;  %vm523_vm12 = vcmp.gt.f32.partialorder %v1329_v15, 20.0 }
 0x22a   :  { %v537_v22 = vmul.f32 1.442695, %v1331_v19  ;;  %v514_v24 = vpop.f32.mrb[6].mxu1  ;;  %vm524_vm1 = vcmp.gt.f32.partialorder %v1331_v19, 20.0 }
 0x22b   :  { %910 = vpow2.f32 %v535_v20  ;;  %v1335_v26 = vadd.f32 %v514_v24, %v415_v21  ;;  %v516_v27 = vpop.f32.mrb[7].mxu1 }
 0x22c   :  { %912 = vpow2.f32 %v537_v22  ;;  %v1337_v28 = vadd.f32 %v516_v27, %v415_v21 }
 0x22d   :  { %v903_v29 = vpop.eup %902  ;;  %v539_v30 = vmul.f32 1.442695, %v1335_v26  ;;  %vm525_vm13 = vcmp.gt.f32.partialorder %v1335_v26, 20.0 }
 0x22e   :  { %v905_v31 = vpop.eup %904  ;;  %v543_v32 = vadd.f32 1.0, %v903_v29  ;;  %v541_v33 = vmul.f32 1.442695, %v1337_v28  ;;  %v546_v40 = vmul.f32 -0.5, %v903_v29  ;;  %v549_v4 = vand.u32 2147483647, %v903_v29 }
 0x22f   :  { %914 = vpow2.f32 %v539_v30  ;;  %v552_v34 = vadd.f32 1.0, %v905_v31  ;;  %v555_v2 = vmul.f32 -0.5, %v905_v31  ;;  %v558_v50 = vand.u32 2147483647, %v905_v31 }
 0x230   :  { %916 = vlog2.f32 %v543_v32  ;;  %v547_v44 = vadd.f32 1.0, %v546_v40  ;;  %vm1356_vm7 = vcmp.lt.f32.partialorder %v549_v4, 0.0004427343 }
 0x231   :  { %v907_v35 = vpop.eup %906  ;;  %918 = vpow2.f32 %v541_v33  ;;  %v556_v37 = vadd.f32 1.0, %v555_v2  ;;  %vm1362_vm8 = vcmp.lt.f32.partialorder %v558_v50, 0.0004427343 }
 0x232   :  { %v909_v36 = vpop.eup %908  ;;  %v561_v39 = vadd.f32 1.0, %v907_v35  ;;  %920 = vlog2.f32 %v552_v34  ;;  %v564_v45 = vmul.f32 -0.5, %v907_v35  ;;  %v567_v38 = vand.u32 2147483647, %v907_v35 }
 0x233   :  { %v570_v41 = vadd.f32 1.0, %v909_v36  ;;  %v573_v46 = vmul.f32 -0.5, %v909_v36  ;;  %v548_v47 = vmul.f32 %v903_v29, %v547_v44  ;;  %v576_v57 = vand.u32 2147483647, %v909_v36 }
 0x234   :  { %922 = vlog2.f32 %v561_v39  ;;  %v565_v56 = vadd.f32 1.0, %v564_v45  ;;  %v557_v18 = vmul.f32 %v905_v31, %v556_v37  ;;  %vm1367_vm9 = vcmp.lt.f32.partialorder %v567_v38, 0.0004427343 }
 0x235   :  { %v1341_v42 = vpop.eup %910  ;;  %924 = vlog2.f32 %v570_v41  ;;  %v574_v48 = vadd.f32 1.0, %v573_v46  ;;  %vm577_vm10 = vcmp.lt.f32.partialorder %v576_v57, 0.0004427343 }
 0x236   :  { %v1343_v43 = vpop.eup %912  ;;  %v579_v9 = vadd.f32 1.0, %v1341_v42  ;;  %v582_v16 = vmul.f32 -0.5, %v1341_v42  ;;  %v566_v63 = vmul.f32 %v907_v35, %v565_v56  ;;  %v585_v11 = vand.u32 2147483647, %v1341_v42 }
 0x237   :  { %v588_v12 = vadd.f32 1.0, %v1343_v43  ;;  %v591_v25 = vmul.f32 -0.5, %v1343_v43  ;;  %v575_v17 = vmul.f32 %v909_v36, %v574_v48  ;;  %v594_v41 = vand.u32 2147483647, %v1343_v43 }
 0x238   :  { %926 = vlog2.f32 %v579_v9  ;;  %v583_v21 = vadd.f32 1.0, %v582_v16  ;;  %vm1395_vm11 = vcmp.lt.f32.partialorder %v585_v11, 0.0004427343 }
 0x239   :  { %v1347_v49 = vpop.eup %914  ;;  %928 = vlog2.f32 %v588_v12  ;;  %v592_v22 = vadd.f32 1.0, %v591_v25  ;;  %vm595_vm15 = vcmp.lt.f32.partialorder %v594_v41, 0.0004427343 }
 0x23a   :  { %v917_v51 = vpop.eup %916  ;;  %v597_v52 = vadd.f32 1.0, %v1347_v49  ;;  %v600_v1 = vmul.f32 -0.5, %v1347_v49  ;;  %v603_v40 = vand.u32 2147483647, %v1347_v49 }
 0x23b   :  { %v1354_v53 = vpop.eup %918  ;;  %v545_v54 = vmul.f32 0.6931472, %v917_v51  ;;  %v593_v46 = vmul.f32 %v1343_v43, %v592_v22 }
 0x23c   :  { %930 = vlog2.f32 %v597_v52  ;;  %v606_v58 = vadd.f32 1.0, %v1354_v53  ;;  %v921_v59 = vpop.eup %920  ;;  %v609_v24 = vmul.f32 -0.5, %v1354_v53  ;;  %v601_v31 = vadd.f32 1.0, %v600_v1 }
 0x23d   :  { %v554_v3 = vmul.f32 0.6931472, %v921_v59  ;;  %v551_v6 = vsel %vm1356_vm7, %v548_v47, %v545_v54  ;;  %vm604_vm14 = vcmp.lt.f32.partialorder %v603_v40, 0.0004427343 }
 0x23e   :  { %v923_v60 = vpop.eup %922  ;;  %932 = vlog2.f32 %v606_v58  ;;  %v615_v29 = vsel %vm519_vm3, %v1317_v61, %v551_v6  ;;  %v610_v9 = vadd.f32 1.0, %v609_v24  ;;  %v602_v12 = vmul.f32 %v1347_v49, %v601_v31 }
 0x23f   :  { %v925_v5 = vpop.eup %924  ;;  %v563_v8 = vmul.f32 0.6931472, %v923_v60  ;;  %v560_v13 = vsel %vm1362_vm8, %v557_v18, %v554_v3  ;;  %vm526_vm3 = vcmp.gt.f32.partialorder %v1337_v28, 20.0 }
 0x240   :  { %v572_v14 = vmul.f32 0.6931472, %v925_v5  ;;  %v616_v36 = vsel %vm520_vm4, %v1319_v0, %v560_v13  ;;  %v612_v0 = vand.u32 2147483647, %v1354_v53  ;;  %v611_v38 = vmul.f32 %v1354_v53, %v610_v9 }
 0x241   :  { %v569_v20 = vsel %vm1367_vm9, %v566_v63, %v563_v8 }
 0x242   :  { %v927_v27 = vpop.eup %926  ;;  %v617_v30 = vsel %vm521_vm5, %v1323_v7, %v569_v20  ;;  %v578_v32 = vsel %vm577_vm10, %v575_v17, %v572_v14  ;;  %v584_v7 = vmul.f32 %v1341_v42, %v583_v21  ;;  %vm613_vm0 = vcmp.lt.f32.partialorder %v612_v0, 0.0004427343 }
 0x243   :  { %v929_v33 = vpop.eup %928  ;;  %v859_v34 = vpack.c.bf16 %v617_v30, %v615_v29  ;;  %v581_v35 = vmul.f32 0.6931472, %v927_v27  ;;  %v618_v39 = vsel %vm522_vm6, %v1325_v10, %v578_v32 }
 0x244   :  { %v857_v61 = vpack.c.bf16 %v618_v39, %v616_v36  ;;  %v590_v2 = vmul.f32 0.6931472, %v929_v33 }
 0x245   :  { %v587_v10 = vsel %vm1395_vm11, %v584_v7, %v581_v35 }
 0x246   :  { %v931_v44 = vpop.eup %930  ;;  %858 = vmatprep.subr.bf16.mxu1 %v857_v61  ;;  %v596_v50 = vsel %vm595_vm15, %v593_v46, %v590_v2  ;;  %v619_v52 = vsel %vm523_vm12, %v1329_v15, %v587_v10  ;;  %v623_v15 = vld [vmem:[%s1434_s5] sm:$0xff] }
 0x247   :  { %v599_v45 = vmul.f32 0.6931472, %v931_v44  ;;  %860 = vmatpush1.bf16.msra.mxu1 %v859_v34  ;;  %v620_v47 = vsel %vm524_vm1, %v1331_v19, %v596_v50 }
 0x248   :  { %v933_v42 = vpop.eup %932 }
 0x249   :  { %v605_v37 = vsel %vm604_vm14, %v602_v12, %v599_v45  ;;  %v608_v51 = vmul.f32 0.6931472, %v933_v42 }
 0x24a   :  { %v621_v54 = vsel %vm525_vm13, %v1335_v26, %v605_v37  ;;  %v628_v26 = vpop.permute.xlu0 %627 }
 0x24b   :  { %v863_v43 = vpack.c.bf16 %v621_v54, %v619_v52  ;;  %v614_v49 = vsel %vm613_vm0, %v611_v38, %v608_v51 }
 0x24c   :  { %v622_v55 = vsel %vm526_vm3, %v1337_v28, %v614_v49 }
 0x24d   :  { %v861_v56 = vpack.c.bf16 %v622_v55, %v620_v47 }
 0x24f   :  { %862 = vmatprep.subr.bf16.mxu1 %v861_v56 }
 0x250   :  { %864 = vmatpush1.bf16.msra.mxu1 %v863_v43 }
 0x253   :  { %760 = vmatmul.mubr.msk.f32.vlgmr.msra.gmra.mrb[8].mxu1 %vm417_vm2, %v623_v15 }
 0x326   :  { %v699_v53 = vpop.f32.mrb[8].mxu1 }
 0x327   :  { %v700_v48 = vadd.f32 %v699_v53, %v628_v26  ;;  %v701_v57 = vpop.f32.mrb[9].mxu1 }
 0x328   :  { %v702_v58 = vadd.f32 %v701_v57, %v628_v26 }
 0x329   :  { %704 = vst [vmem:[#allocation2] sm:$0xff] %v700_v48 }
 0x32a   :  { %705 = vst [vmem:[#allocation2 + $0x8] sm:$0xff] %v702_v58 }
 0x32b   :  { %945 = shalt.err (!%p942_p4)
}
 0x32c   :  { %s946_s26 = scalar_lea.hbm %s1436_s7, 256 }
 0x32d   :  { %p947_p5 = scmp.ne.s32.totalorder %s1436_s7, %s946_s26  ;;  %p950_p6 = scmp.lt.u32.totalorder %s946_s26, %s1436_s7 }
 0x32f   :  { %p952_p7 = pnand %p950_p6, %p947_p5 }
 0x331   :  { %955 = shalt.err (!%p952_p7)
}
 0x332   :  { %715 = dma.vmem_to_hbm [thread:$0]  %s713_s23, 256, %s1436_s7, [#allocation3]  }
 0x333   :  { %956 = dma.done.wait [#allocation3], 256  }
 0x334   :  { %957 = vsyncadd [#allocation3], 4294967040 }
 0x335   :  { %719 = vsyncpa [#allocation3], 1 }

</bundles_post_ra>
